<compile_context>
chip_gen: v5e
topology: v5e:2x2
jax: 0.10.0
libtpu: 0.0.40
codegen_flags: <defaults>
</compile_context>

<pallas_src>
import jax
import jax.numpy as jnp
from jax.experimental import pallas as pl
from jax.experimental.pallas import tpu as pltpu

HEAD_PAD = 128  # packed head out-dim (lane 0 = realness, lanes 1:3 = class logits)


def make_kernel(H):
    def kernel(fp_ref, ft_ref, wfp1_ref, wft1_ref, whh_ref, wh_ref, b_ref, out_ref):
        f32 = jnp.float32
        bf16 = jnp.bfloat16

        fp = fp_ref[...].astype(bf16)                       # [TB, fp_dim]
        ft = ft_ref[...].astype(bf16)                       # [TB, ft_dim]

        # packed f32 biases (static slices of the [8, Wb] slab)
        b_fp1 = b_ref[0:1, :H]
        b_ft1 = b_ref[1:2, :H]
        b_fp2 = b_ref[2:3, :H]
        b_ft2 = b_ref[3:4, :H]
        b_c = b_ref[4:5, :H]
        b_h = b_ref[5:6, :HEAD_PAD]

        # branch layer 1: two dense dots (no host concat, no block-diag zeros)
        a = jnp.maximum(jnp.dot(fp, wfp1_ref[...], preferred_element_type=f32) + b_fp1, 0.0)
        b = jnp.maximum(jnp.dot(ft, wft1_ref[...], preferred_element_type=f32) + b_ft1, 0.0)
        # branch layer 2
        a = jnp.maximum(jnp.dot(a.astype(bf16), whh_ref[0], preferred_element_type=f32) + b_fp2, 0.0)
        b = jnp.maximum(jnp.dot(b.astype(bf16), whh_ref[1], preferred_element_type=f32) + b_ft2, 0.0)
        # combined layer: concat folded algebraically -> two H x H dots
        c = jnp.dot(a.astype(bf16), whh_ref[2], preferred_element_type=f32)
        c = c + jnp.dot(b.astype(bf16), whh_ref[3], preferred_element_type=f32)
        c = jnp.maximum(c + b_c, 0.0)

        # fused heads -> single lane-dense [TB, 128] slab; sigmoid on lane 0 only
        head = jnp.dot(c.astype(bf16), wh_ref[...], preferred_element_type=f32) + b_h
        lane = jax.lax.broadcasted_iota(jnp.int32, head.shape, 1)
        head = jnp.where(lane == 0, jax.nn.sigmoid(head), head)
        out_ref[...] = head.astype(out_ref.dtype)

    return kernel


def init_params(key, fingerprint_dim, feature_dim, hidden_dim):
    """Deterministic init. All Linear weights stored as [in, out]
    (transposed relative to torch's [out, in])."""
    ks = jax.random.split(key, 7)

    def lin(k, fan_in, fan_out):
        bound = 1.0 / jnp.sqrt(fan_in)
        kw, kb = jax.random.split(k)
        w = jax.random.uniform(kw, (fan_in, fan_out), jnp.float32, -bound, bound)
        b = jax.random.uniform(kb, (1, fan_out), jnp.float32, -bound, bound)
        return w, b

    H = hidden_dim
    w_fp1, b_fp1 = lin(ks[0], fingerprint_dim, H)
    w_fp2, b_fp2 = lin(ks[1], H, H)
    w_ft1, b_ft1 = lin(ks[2], feature_dim, H)
    w_ft2, b_ft2 = lin(ks[3], H, H)
    w_c, b_c = lin(ks[4], 2 * H, H)          # combined Linear(2H, H)
    w_real, b_real = lin(ks[5], H, 1)
    w_cls, b_cls = lin(ks[6], H, 2)
    return {
        "w_fp1": w_fp1, "b_fp1": b_fp1, "w_fp2": w_fp2, "b_fp2": b_fp2,
        "w_ft1": w_ft1, "b_ft1": b_ft1, "w_ft2": w_ft2, "b_ft2": b_ft2,
        "w_c": w_c, "b_c": b_c,
        "w_real": w_real, "b_real": b_real,
        "w_cls": w_cls, "b_cls": b_cls,
        "fingerprint_dim": fingerprint_dim,
        "feature_dim": feature_dim,
        "hidden_dim": hidden_dim,
    }


def pack_params(p):
    """Host-side one-time packing into bf16 weight slabs + one f32 bias slab."""
    H = p["hidden_dim"]
    fp_dim = p["fingerprint_dim"]
    ft_dim = p["feature_dim"]
    bf16 = jnp.bfloat16

    w_fp1 = p["w_fp1"].astype(bf16)                                   # [fp_dim, H]
    w_ft1 = p["w_ft1"].astype(bf16)                                   # [ft_dim, H]
    # stacked second-stage H x H weights: [fp2, ft2, w_c_top, w_c_bot]
    w_hh = jnp.stack([p["w_fp2"], p["w_ft2"],
                      p["w_c"][:H, :], p["w_c"][H:, :]]).astype(bf16)  # [4, H, H]
    # fused heads, lane-padded to 128 (lane 0 = realness, lanes 1:3 = class)
    wh = jnp.zeros((H, HEAD_PAD), jnp.float32)
    wh = wh.at[:, 0:1].set(p["w_real"]).at[:, 1:3].set(p["w_cls"]).astype(bf16)

    # packed f32 biases (kept f32 so post-dot math stays f32 on v5e)
    Wb = ((max(H, HEAD_PAD) + 127) // 128) * 128
    bias = jnp.zeros((8, Wb), jnp.float32)
    bias = bias.at[0, :H].set(p["b_fp1"][0]).at[1, :H].set(p["b_ft1"][0])
    bias = bias.at[2, :H].set(p["b_fp2"][0]).at[3, :H].set(p["b_ft2"][0])
    bias = bias.at[4, :H].set(p["b_c"][0])
    bias = bias.at[5, 0:1].set(p["b_real"][0]).at[5, 1:3].set(p["b_cls"][0])

    return {"w_fp1": w_fp1, "w_ft1": w_ft1, "w_hh": w_hh, "wh": wh, "bias": bias,
            "H": H, "fp_dim": fp_dim, "ft_dim": ft_dim}


def _round_up(x, m):
    return ((x + m - 1) // m) * m


def _choose_batch_tile(B):
    # Tiny batches: a single full-array block (escape hatch if B % 8 != 0).
    # Otherwise: >= 2 grid steps (keeps both v7x TensorCores busy), tile a
    # multiple of 8, capped at 1024 rows (amortizes ~0.35 us/step overhead
    # while staying far under v7x's 64 MiB VMEM at realistic dims).
    if B <= 16:
        return B
    return min(_round_up(pl.cdiv(B, 2), 8), 1024)


def _vmem_limit_bytes(TB, fp_dim, ft_dim, H):
    def ru(x, m):
        return ((x + m - 1) // m) * m
    tb = ru(max(TB, 8), 8)
    # single-buffered bf16 weights + f32 bias slab
    w = 2 * (ru(fp_dim, 16) * ru(H, 128) + ru(ft_dim, 16) * ru(H, 128)
             + 4 * ru(H, 16) * ru(H, 128) + ru(H, 16) * HEAD_PAD)
    b = 8 * ru(max(H, HEAD_PAD), 128) * 4
    # double-buffered f32 activation tiles + bf16 output tile
    act = 2 * tb * (ru(fp_dim, 128) + ru(ft_dim, 128)) * 4
    out = 2 * tb * HEAD_PAD * 2
    total = w + b + act + out
    return int(min(max(2 * total + (4 << 20), 8 << 20), 64 << 20))


def discriminator_forward(fingerprint, features, packed):
    """fingerprint: [B, fp_dim], features: [B, feat_dim] -> dict of outputs."""
    H = packed["H"]
    fp_dim = packed["fp_dim"]
    ft_dim = packed["ft_dim"]
    B = fingerprint.shape[0]

    fp = fingerprint.astype(jnp.float32)
    ft = features.astype(jnp.float32)

    TB = _choose_batch_tile(B)
    grid = (pl.cdiv(B, TB),)   # no host-side pad: Pallas masks the ragged final block

    w_fp1, w_ft1, w_hh, wh, bias = (packed["w_fp1"], packed["w_ft1"],
                                    packed["w_hh"], packed["wh"], packed["bias"])

    weight_bytes = sum(int(a.size) * a.dtype.itemsize
                       for a in (w_fp1, w_ft1, w_hh, wh, bias))
    cost = pl.CostEstimate(
        flops=2 * B * (fp_dim * H + ft_dim * H + 4 * H * H + H * HEAD_PAD),
        transcendentals=B * HEAD_PAD,
        bytes_accessed=B * (fp_dim + ft_dim) * 4 + weight_bytes + B * HEAD_PAD * 2,
    )

    def resident(shape):
        # constant-index weight/bias block: VMEM-resident across the whole grid,
        # single-buffered (double-buffering a constant block is pure VMEM waste).
        nd = len(shape)

        def idx(i):
            return (0,) * nd

        return pl.BlockSpec(shape, idx, pipeline_mode=pl.Buffered(1))

    out = pl.pallas_call(
        make_kernel(H),
        out_shape=jax.ShapeDtypeStruct((B, HEAD_PAD), jnp.bfloat16),
        grid=grid,
        in_specs=[
            pl.BlockSpec((TB, fp_dim), lambda i: (i, 0)),   # fingerprint tile (batch-pipelined)
            pl.BlockSpec((TB, ft_dim), lambda i: (i, 0)),   # feature tile (batch-pipelined)
            resident(w_fp1.shape),
            resident(w_ft1.shape),
            resident(w_hh.shape),
            resident(wh.shape),
            resident(bias.shape),
        ],
        out_specs=pl.BlockSpec((TB, HEAD_PAD), lambda i: (i, 0)),
        compiler_params=pltpu.CompilerParams(
            dimension_semantics=("parallel",),
            vmem_limit_bytes=_vmem_limit_bytes(TB, fp_dim, ft_dim, H)),
        cost_estimate=cost,
    )(fp, ft, w_fp1, w_ft1, w_hh, wh, bias)

    out = out.astype(jnp.float32)
    return {"realness": out[:, 0:1], "class_logits": out[:, 1:3]}


if __name__ == "__main__":
    batch = 32
    fingerprint_dim = 64   # Morgan fingerprint dim (small synthetic)
    feature_dim = 8        # e.g. HOMO / LUMO / Gap + extras
    hidden_dim = 32

    key = jax.random.PRNGKey(0)
    k_fp, k_ft, k_params = jax.random.split(key, 3)
    fingerprint = (jax.random.uniform(k_fp, (batch, fingerprint_dim)) > 0.5).astype(jnp.float32)
    features = jax.random.normal(k_ft, (batch, feature_dim), jnp.float32)
    params = init_params(k_params, fingerprint_dim, feature_dim, hidden_dim)
    packed = pack_params(params)

    out = discriminator_forward(fingerprint, features, packed)
    jax.block_until_ready(out)

    # pure-JAX f32 reference check against the UN-packed parameters
    def ref(fp, ft, p):
        relu = lambda v: jnp.maximum(v, 0.0)
        a = relu(fp @ p["w_fp1"] + p["b_fp1"])
        a = relu(a @ p["w_fp2"] + p["b_fp2"])
        b = relu(ft @ p["w_ft1"] + p["b_ft1"])
        b = relu(b @ p["w_ft2"] + p["b_ft2"])
        c = relu(jnp.concatenate([a, b], axis=1) @ p["w_c"] + p["b_c"])
        return jax.nn.sigmoid(c @ p["w_real"] + p["b_real"]), c @ p["w_cls"] + p["b_cls"]

    r_ref, l_ref = ref(fingerprint, features, params)
    assert out["realness"].shape == (batch, 1)
    assert out["class_logits"].shape == (batch, 2)
    # bf16 weights / bf16 activations in the kernel -> relaxed tolerance
    assert jnp.allclose(out["realness"], r_ref, atol=2e-2, rtol=2e-2), "realness mismatch"
    assert jnp.allclose(out["class_logits"], l_ref, atol=2e-2, rtol=2e-2), "logits mismatch"
    print("KERNEL_OK")
</pallas_src>

<mosaic_0001>
module attributes {stable_mosaic.version = 11 : i64} {
  func.func @kernel(%arg0: i32, %arg1: memref<16x64xf32, #tpu.memory_space<vmem>>, %arg2: memref<16x8xf32, #tpu.memory_space<vmem>>, %arg3: memref<64x32xbf16, #tpu.memory_space<vmem>>, %arg4: memref<8x32xbf16, #tpu.memory_space<vmem>>, %arg5: memref<4x32x32xbf16, #tpu.memory_space<vmem>>, %arg6: memref<32x128xbf16, #tpu.memory_space<vmem>>, %arg7: memref<8x128xf32, #tpu.memory_space<vmem>>, %arg8: memref<16x128xbf16, #tpu.memory_space<vmem>>) attributes {dimension_semantics = [#tpu.dimension_semantics<parallel>], iteration_bounds = array<i64: 2>, scalar_prefetch = 0 : i64, scratch_operands = 0 : i64, tpu.core_type = #tpu.core_type<tc>, window_params = [{transform_indices = @transform_0, window_bounds = array<i64: 16, 64>}, {transform_indices = @transform_1, window_bounds = array<i64: 16, 8>}, {pipeline_mode = #tpu.pipeline_mode<synchronous>, transform_indices = @transform_2, window_bounds = array<i64: 64, 32>}, {pipeline_mode = #tpu.pipeline_mode<synchronous>, transform_indices = @transform_3, window_bounds = array<i64: 8, 32>}, {pipeline_mode = #tpu.pipeline_mode<synchronous>, transform_indices = @transform_4, window_bounds = array<i64: 4, 32, 32>}, {pipeline_mode = #tpu.pipeline_mode<synchronous>, transform_indices = @transform_5, window_bounds = array<i64: 32, 128>}, {pipeline_mode = #tpu.pipeline_mode<synchronous>, transform_indices = @transform_6, window_bounds = array<i64: 8, 128>}, {transform_indices = @transform_7, window_bounds = array<i64: 16, 128>}]} {
    %c0 = arith.constant 0 : index
    %c0_0 = arith.constant 0 : index
    %0 = vector.load %arg1[%c0, %c0_0] : memref<16x64xf32, #tpu.memory_space<vmem>>, vector<16x64xf32>
    %1 = arith.truncf %0 : vector<16x64xf32> to vector<16x64xbf16>
    %c0_1 = arith.constant 0 : index
    %c0_2 = arith.constant 0 : index
    %2 = vector.load %arg2[%c0_1, %c0_2] : memref<16x8xf32, #tpu.memory_space<vmem>>, vector<16x8xf32>
    %3 = arith.truncf %2 : vector<16x8xf32> to vector<16x8xbf16>
    %c0_3 = arith.constant 0 : index
    %c0_4 = arith.constant 0 : index
    %4 = vector.load %arg7[%c0_3, %c0_4] : memref<8x128xf32, #tpu.memory_space<vmem>>, vector<1x32xf32>
    %c1 = arith.constant 1 : index
    %c0_5 = arith.constant 0 : index
    %5 = vector.load %arg7[%c1, %c0_5] : memref<8x128xf32, #tpu.memory_space<vmem>>, vector<1x32xf32>
    %c2 = arith.constant 2 : index
    %c0_6 = arith.constant 0 : index
    %6 = vector.load %arg7[%c2, %c0_6] : memref<8x128xf32, #tpu.memory_space<vmem>>, vector<1x32xf32>
    %c3 = arith.constant 3 : index
    %c0_7 = arith.constant 0 : index
    %7 = vector.load %arg7[%c3, %c0_7] : memref<8x128xf32, #tpu.memory_space<vmem>>, vector<1x32xf32>
    %c4 = arith.constant 4 : index
    %c0_8 = arith.constant 0 : index
    %8 = vector.load %arg7[%c4, %c0_8] : memref<8x128xf32, #tpu.memory_space<vmem>>, vector<1x32xf32>
    %c5 = arith.constant 5 : index
    %c0_9 = arith.constant 0 : index
    %9 = vector.load %arg7[%c5, %c0_9] : memref<8x128xf32, #tpu.memory_space<vmem>>, vector<1x128xf32>
    %c0_10 = arith.constant 0 : index
    %c0_11 = arith.constant 0 : index
    %10 = vector.load %arg3[%c0_10, %c0_11] : memref<64x32xbf16, #tpu.memory_space<vmem>>, vector<64x32xbf16>
    %cst = arith.constant dense<0.000000e+00> : vector<16x32xf32>
    %11 = tpu.matmul %1, %10, %cst {dimension_numbers = #tpu.dot_dimension_numbers<[1], [0], [0], [1], [0, 0, 1, 1], [], []>} : vector<16x64xbf16>, vector<64x32xbf16>, vector<16x32xf32> -> vector<16x32xf32>
    %12 = vector.broadcast %4 : vector<1x32xf32> to vector<16x32xf32>
    %13 = arith.addf %11, %12 : vector<16x32xf32>
    %cst_12 = arith.constant 0.000000e+00 : f32
    %14 = vector.broadcast %cst_12 : f32 to vector<16x32xf32>
    %15 = arith.maximumf %13, %14 : vector<16x32xf32>
    %c0_13 = arith.constant 0 : index
    %c0_14 = arith.constant 0 : index
    %16 = vector.load %arg4[%c0_13, %c0_14] : memref<8x32xbf16, #tpu.memory_space<vmem>>, vector<8x32xbf16>
    %cst_15 = arith.constant dense<0.000000e+00> : vector<16x32xf32>
    %17 = tpu.matmul %3, %16, %cst_15 {dimension_numbers = #tpu.dot_dimension_numbers<[1], [0], [0], [1], [0, 0, 1, 1], [], []>} : vector<16x8xbf16>, vector<8x32xbf16>, vector<16x32xf32> -> vector<16x32xf32>
    %18 = vector.broadcast %5 : vector<1x32xf32> to vector<16x32xf32>
    %19 = arith.addf %17, %18 : vector<16x32xf32>
    %cst_16 = arith.constant 0.000000e+00 : f32
    %20 = vector.broadcast %cst_16 : f32 to vector<16x32xf32>
    %21 = arith.maximumf %19, %20 : vector<16x32xf32>
    %22 = arith.truncf %15 : vector<16x32xf32> to vector<16x32xbf16>
    %c0_17 = arith.constant 0 : index
    %c0_18 = arith.constant 0 : index
    %c0_19 = arith.constant 0 : index
    %23 = vector.load %arg5[%c0_17, %c0_18, %c0_19] : memref<4x32x32xbf16, #tpu.memory_space<vmem>>, vector<1x32x32xbf16>
    %24 = vector.shape_cast %23 : vector<1x32x32xbf16> to vector<32x32xbf16>
    %cst_20 = arith.constant dense<0.000000e+00> : vector<16x32xf32>
    %25 = tpu.matmul %22, %24, %cst_20 {dimension_numbers = #tpu.dot_dimension_numbers<[1], [0], [0], [1], [0, 0, 1, 1], [], []>} : vector<16x32xbf16>, vector<32x32xbf16>, vector<16x32xf32> -> vector<16x32xf32>
    %26 = vector.broadcast %6 : vector<1x32xf32> to vector<16x32xf32>
    %27 = arith.addf %25, %26 : vector<16x32xf32>
    %cst_21 = arith.constant 0.000000e+00 : f32
    %28 = vector.broadcast %cst_21 : f32 to vector<16x32xf32>
    %29 = arith.maximumf %27, %28 : vector<16x32xf32>
    %30 = arith.truncf %21 : vector<16x32xf32> to vector<16x32xbf16>
    %c1_22 = arith.constant 1 : index
    %c0_23 = arith.constant 0 : index
    %c0_24 = arith.constant 0 : index
    %31 = vector.load %arg5[%c1_22, %c0_23, %c0_24] : memref<4x32x32xbf16, #tpu.memory_space<vmem>>, vector<1x32x32xbf16>
    %32 = vector.shape_cast %31 : vector<1x32x32xbf16> to vector<32x32xbf16>
    %cst_25 = arith.constant dense<0.000000e+00> : vector<16x32xf32>
    %33 = tpu.matmul %30, %32, %cst_25 {dimension_numbers = #tpu.dot_dimension_numbers<[1], [0], [0], [1], [0, 0, 1, 1], [], []>} : vector<16x32xbf16>, vector<32x32xbf16>, vector<16x32xf32> -> vector<16x32xf32>
    %34 = vector.broadcast %7 : vector<1x32xf32> to vector<16x32xf32>
    %35 = arith.addf %33, %34 : vector<16x32xf32>
    %cst_26 = arith.constant 0.000000e+00 : f32
    %36 = vector.broadcast %cst_26 : f32 to vector<16x32xf32>
    %37 = arith.maximumf %35, %36 : vector<16x32xf32>
    %38 = arith.truncf %29 : vector<16x32xf32> to vector<16x32xbf16>
    %c2_27 = arith.constant 2 : index
    %c0_28 = arith.constant 0 : index
    %c0_29 = arith.constant 0 : index
    %39 = vector.load %arg5[%c2_27, %c0_28, %c0_29] : memref<4x32x32xbf16, #tpu.memory_space<vmem>>, vector<1x32x32xbf16>
    %40 = vector.shape_cast %39 : vector<1x32x32xbf16> to vector<32x32xbf16>
    %cst_30 = arith.constant dense<0.000000e+00> : vector<16x32xf32>
    %41 = tpu.matmul %38, %40, %cst_30 {dimension_numbers = #tpu.dot_dimension_numbers<[1], [0], [0], [1], [0, 0, 1, 1], [], []>} : vector<16x32xbf16>, vector<32x32xbf16>, vector<16x32xf32> -> vector<16x32xf32>
    %42 = arith.truncf %37 : vector<16x32xf32> to vector<16x32xbf16>
    %c3_31 = arith.constant 3 : index
    %c0_32 = arith.constant 0 : index
    %c0_33 = arith.constant 0 : index
    %43 = vector.load %arg5[%c3_31, %c0_32, %c0_33] : memref<4x32x32xbf16, #tpu.memory_space<vmem>>, vector<1x32x32xbf16>
    %44 = vector.shape_cast %43 : vector<1x32x32xbf16> to vector<32x32xbf16>
    %cst_34 = arith.constant dense<0.000000e+00> : vector<16x32xf32>
    %45 = tpu.matmul %42, %44, %cst_34 {dimension_numbers = #tpu.dot_dimension_numbers<[1], [0], [0], [1], [0, 0, 1, 1], [], []>} : vector<16x32xbf16>, vector<32x32xbf16>, vector<16x32xf32> -> vector<16x32xf32>
    %46 = arith.addf %41, %45 : vector<16x32xf32>
    %47 = vector.broadcast %8 : vector<1x32xf32> to vector<16x32xf32>
    %48 = arith.addf %46, %47 : vector<16x32xf32>
    %cst_35 = arith.constant 0.000000e+00 : f32
    %49 = vector.broadcast %cst_35 : f32 to vector<16x32xf32>
    %50 = arith.maximumf %48, %49 : vector<16x32xf32>
    %51 = arith.truncf %50 : vector<16x32xf32> to vector<16x32xbf16>
    %c0_36 = arith.constant 0 : index
    %c0_37 = arith.constant 0 : index
    %52 = vector.load %arg6[%c0_36, %c0_37] : memref<32x128xbf16, #tpu.memory_space<vmem>>, vector<32x128xbf16>
    %cst_38 = arith.constant dense<0.000000e+00> : vector<16x128xf32>
    %53 = tpu.matmul %51, %52, %cst_38 {dimension_numbers = #tpu.dot_dimension_numbers<[1], [0], [0], [1], [0, 0, 1, 1], [], []>} : vector<16x32xbf16>, vector<32x128xbf16>, vector<16x128xf32> -> vector<16x128xf32>
    %54 = vector.broadcast %9 : vector<1x128xf32> to vector<16x128xf32>
    %55 = arith.addf %53, %54 : vector<16x128xf32>
    %56 = tpu.iota {dimensions = array<i32: 1>} : vector<16x128xi32>
    %c0_i32 = arith.constant 0 : i32
    %57 = vector.broadcast %c0_i32 : i32 to vector<16x128xi32>
    %58 = arith.cmpi eq, %56, %57 : vector<16x128xi32>
    %59 = arith.negf %55 : vector<16x128xf32>
    %60 = math.exp %59 : vector<16x128xf32>
    %cst_39 = arith.constant 1.000000e+00 : f32
    %61 = vector.broadcast %cst_39 : f32 to vector<16x128xf32>
    %62 = arith.addf %61, %60 : vector<16x128xf32>
    %63 = arith.divf %61, %62 : vector<16x128xf32>
    %64 = arith.select %58, %63, %55 : vector<16x128xi1>, vector<16x128xf32>
    %65 = arith.truncf %64 : vector<16x128xf32> to vector<16x128xbf16>
    %c0_40 = arith.constant 0 : index
    %c0_41 = arith.constant 0 : index
    %66 = vector.load %arg8[%c0_40, %c0_41] : memref<16x128xbf16, #tpu.memory_space<vmem>>, vector<16x128xbf16>
    tpu.vector_store %arg8[%c0_40, %c0_41], %65 {strides = array<i32>} : memref<16x128xbf16, #tpu.memory_space<vmem>>, vector<16x128xbf16>,
    return
  }
  func.func @transform_0(%arg0: i32) -> (i32, i32) {
    %c0_i32 = arith.constant 0 : i32
    %c0_i32_0 = arith.constant 0 : i32
    return %arg0, %c0_i32 : i32, i32
  }
  func.func @transform_1(%arg0: i32) -> (i32, i32) {
    %c0_i32 = arith.constant 0 : i32
    %c0_i32_0 = arith.constant 0 : i32
    return %arg0, %c0_i32 : i32, i32
  }
  func.func @transform_2(%arg0: i32) -> (i32, i32) {
    %c0_i32 = arith.constant 0 : i32
    %c0_i32_0 = arith.constant 0 : i32
    %c0_i32_1 = arith.constant 0 : i32
    return %c0_i32, %c0_i32_0 : i32, i32
  }
  func.func @transform_3(%arg0: i32) -> (i32, i32) {
    %c0_i32 = arith.constant 0 : i32
    %c0_i32_0 = arith.constant 0 : i32
    %c0_i32_1 = arith.constant 0 : i32
    return %c0_i32, %c0_i32_0 : i32, i32
  }
  func.func @transform_4(%arg0: i32) -> (i32, i32, i32) {
    %c0_i32 = arith.constant 0 : i32
    %c0_i32_0 = arith.constant 0 : i32
    %c0_i32_1 = arith.constant 0 : i32
    %c0_i32_2 = arith.constant 0 : i32
    return %c0_i32, %c0_i32_0, %c0_i32_1 : i32, i32, i32
  }
  func.func @transform_5(%arg0: i32) -> (i32, i32) {
    %c0_i32 = arith.constant 0 : i32
    %c0_i32_0 = arith.constant 0 : i32
    %c0_i32_1 = arith.constant 0 : i32
    return %c0_i32, %c0_i32_0 : i32, i32
  }
  func.func @transform_6(%arg0: i32) -> (i32, i32) {
    %c0_i32 = arith.constant 0 : i32
    %c0_i32_0 = arith.constant 0 : i32
    %c0_i32_1 = arith.constant 0 : i32
    return %c0_i32, %c0_i32_0 : i32, i32
  }
  func.func @transform_7(%arg0: i32) -> (i32, i32) {
    %c0_i32 = arith.constant 0 : i32
    %c0_i32_0 = arith.constant 0 : i32
    return %arg0, %c0_i32 : i32, i32
  }
}

</mosaic_0001>

<bundles_post_ra>
// kernel: tpu_custom_call.1
= control target key start
LH: loop header
LB: loop body
LE: loop exit
PB: predicated region body
PF: predicated region fallthrough
CT: control target
= control target key end

     0   :  { %s1354_s0 = inlined_call_operand.hbm [shape: f32[32,64], index: 0, kind: input, shape index: {}]   ;;  %s1355_s1 = inlined_call_operand.vmem [shape: f32[32,8], index: 1, kind: input, shape index: {}]   ;;  %s1356_s2 = inlined_call_operand.vmem [shape: bf16[64,32], index: 2, kind: input, shape index: {}]   ;;  %s1357_s3 = inlined_call_operand.hbm [shape: bf16[8,32], index: 3, kind: input, shape index: {}]   ;;  %s1358_s4 = inlined_call_operand.vmem [shape: bf16[4,32,32], index: 4, kind: input, shape index: {}]   ;;  %s1359_s5 = inlined_call_operand.vmem [shape: bf16[32,128], index: 5, kind: input, shape index: {}]   ;;  %s1360_s6 = inlined_call_operand.vmem [shape: f32[8,128], index: 6, kind: input, shape index: {}]   ;;  %s1361_s7 = inlined_call_operand.hbm [shape: bf16[32,128], index: 7, kind: output, shape index: {}]  }
   0x1   :  { %1365 = sst [smem:[#allocation14_spill]] %s1357_s3 }
   0x2   :  { %12 = vsyncpa [#allocation3], 0 }
   0x3   :  { %14 = vsyncpa [#allocation3 + $0x1], 0 }
   0x4   :  { %15 = vsyncpa [#allocation6], 0 }
   0x5   :  { %16 = vsyncpa [#allocation4], 0 }
   0x6   :  { %18 = vsyncpa [#allocation4 + $0x1], 0  ;;  %s1142_s24 = smov 0   ;;  %s1144_s25 = smov 0  }
   0x7   :  { %s1146_s26 = smov 0   ;;  %s1148_s27 = smov 0  }
   0x8 LB: > { %1366 = sst [smem:[#allocation11_spill]] %s1091_s26  ;;  %s1163_s28 = sadd.s32 4294967295, %s1095_s27   ;;  %s1095_s27 = sphi %s1148_s27, %s1377_s27   ;;  %s1091_s26 = sphi %s1146_s26, %s1379_s26   ;;  %s1087_s25 = sphi %s1144_s25, %s1381_s25   ;;  %s1083_s24 = sphi %s1142_s24, %s1380_s24  }
   0x9   : > { %s774_s29 = sadd.s32 4294967294, %s1095_s27   ;;  %s1167_s30 = sadd.s32 1, %s1095_s27  }
   0xa   : > { %1367 = sst [smem:[#allocation12_spill]] %s1167_s30  ;;  %s31_s8 = sadd.s32 1, %s1091_s26 }
   0xb   : > { %s28_s9 = ssub.s32 %s1095_s27, %s1167_s30  ;;  %p38_p0 = scmp.ne.s32.totalorder %s1091_s26, %s1087_s25 }
   0xc   : > { %p29_p1 = scmp.eq.s32.totalorder %s28_s9, 0  ;;  %p39_p2 = scmp.eq.s32.totalorder %s1095_s27, 0 }
   0xd   : > { %p44_p3 = scmp.ne.s32.totalorder %s1087_s25, %s1083_s24  ;;  %p45_p4 = scmp.eq.s32.totalorder %s1163_s28, 0 }
   0xe   : > { %s1179_s10 = scalar_select %p29_p1, %s1091_s26, %s31_s8  }
   0xf   : > { %p1181_p5 = por %p39_p2, %p38_p0  ;;  %p1187_p6 = por %p45_p4, %p44_p3 }
  0x10   : > { %1368 = sst [smem:[#allocation13_spill]] %s1179_s10  ;;  %p199_p7 = scmp.eq.s32.totalorder %s1163_s28, 1 }
  0x11   : > { %p205_p8 = scmp.eq.s32.totalorder %s774_s29, 1  ;;  %p775_p9 = scmp.ge.s32.totalorder %s1095_s27, 1 }
  0x12   : > { %p212_p10 = scmp.lt.s32.totalorder %s1095_s27, 3  ;;  %p1194_p11 = por %p199_p7, %p38_p0 }
  0x13   : > { %p1198_p12 = por %p205_p8, %p44_p3  ;;  %s1374_s3 = sld [smem:[#allocation14_spill]] }
  0x14   : > { %p1202_p13 = pnand %p775_p9, %p212_p10  ;;  %s1097_s19 = smov [#allocation5]  }
  0x15   : > { %s229_s20 = sshll.u32 %s1097_s19, 4  ;;  %p911_p3 = scmp.lt.s32.totalorder %s1095_s27, 2  ;;  %s230_s20 = int_to_ptr.vmem [resolvable:$true] %s229_s20 }
  0x16   : > { %p898_p1 = pneg %p1202_p13  ;;  %s249_s21 = sand.u32 1, %s1091_s26  }
  0x17   : > { %p1218_p7 = pnand %p911_p3, %p1181_p5  ;;  %s778_s23 = sshll.u32 %s249_s21, 4 }
  0x18   : > { %p899_p2 = pnand %p898_p1, %p45_p4  ;;  %s869_s29 = sshll.u32 %s1095_s27, 4 }
  0x19   : > { %s227_s18 = sshll.u32 %s1374_s3, 4  ;;  %s258_s16 = scalar_lea.hbm %s1354_s0, %s869_s29  ;;  %s228_s18 = int_to_ptr.hbm [resolvable:$true] %s227_s18 }
  0x1a   : > { %901 = dma.hbm_to_vmem [thread:$0]  (!%p899_p2), %s228_s18, 64, %s230_s20, [#allocation6]  }
  0x1b   : > { %s259_s17 = sshll.u32 %s258_s16, 4  ;;  %s253_s19 = scalar_lea.vmem [#allocation2], %s778_s23  ;;  %s260_s17 = int_to_ptr.hbm [resolvable:$true] %s259_s17 }
  0x1c   : > { %s261_s3 = sshll.u32 %s253_s19, 4  ;;  %s250_s10 = scalar_lea.sflag [#allocation3], %s249_s21  ;;  %s262_s3 = int_to_ptr.vmem [resolvable:$true] %s261_s3 }
  0x1d   : > { %s995_s26 = sshra.s32 %s260_s17, 4  ;;  %p999_p8 = pneg %p1218_p7  ;;  %s996_s26 = int_to_ptr.hbm [resolvable:$true] %s995_s26 }
  0x1e   : > { %s997_s11 = scalar_lea.hbm %s996_s26, 16  ;;  %s1002_s30 = scalar_lea.hbm %s1354_s0, 32 }
  0x1f   : > { %p998_p5 = scmp.ne.s32.totalorder %s996_s26, %s997_s11  ;;  %p1003_p1 = scmp.lt.s32.totalorder %s996_s26, %s1354_s0 }
  0x20   : > { %p1004_p2 = scmp.lt.s32.totalorder %s1002_s30, %s997_s11 }
  0x21   : > { %p1000_p9 = pnand %p999_p8, %p998_p5 }
  0x22   : > { %p1005_p3 = por %p1004_p2, %p1003_p1 }
  0x23   : > { %p1001_p10 = pneg %p1000_p9 }
  0x25   : > { %p1006_p0 = pnand %p1005_p3, %p1001_p10 }
  0x27   : > { %1009 = shalt.err (!%p1006_p0)
}
  0x28   : > { %s1098_s21 = smov 128   ;;  %s1099_s23 = smov 8  }
  0x29   : > { %905 = dma.hbm_to_vmem [thread:$0]  (!%p1218_p7), %s260_s17, 256, %s262_s3, %s250_s10, %s1098_s21, %s1098_s21, %s1099_s23  }
  0x2a   : > { %282 = sbr.rel (%p1202_p13) target bundleno = 678 (0x2a6), region = 48  ;;  %s1239_s9 = sand.u32 (!%p1202_p13), 1, %s1087_s25  }
  0x2b   : > { %s782_s16 = sshll.u32 (!%p1202_p13), %s1239_s9, 4  ;;  %s285_s26 = scalar_lea.sflag (!%p1202_p13), [#allocation3], %s1239_s9 }
  0x2c   : > { %s288_s30 = scalar_lea.vmem (!%p1202_p13), [#allocation2], %s782_s16 }
  0x2f   : > { %1070 = dma.done.wait (%p1187_p6), %s285_s26, 256  }
  0x30   : > { %1072 = vsyncadd (%p1187_p6), %s285_s26, 4294967040 }
  0x31   : > { %1074 = dma.done.wait (%p45_p4), [#allocation6], 64  }
  0x32   : > { %1076 = vsyncadd (%p45_p4), [#allocation6], 4294967232  ;;  %s785_s3 = sshll.u32 %s1163_s28, 1  ;;  %vm410_vm0 = vcmask 1043456   ;;  %v404_v0 = vld [vmem:[#allocation5] sm:$0xf] }
  0x33   : > { %p332_p13 = scmp.lt.s32.totalorder %s785_s3, 3  ;;  %v873_v1 = vld [vmem:[%s1356_s2 + $0x18] sm:$0xff]  ;;  %v412_v3 = vsel %vm410_vm0, %v404_v0, 0  ;;  %vm406_vm1 = vcmask 64512   ;;  %v872_v6 = vld [vmem:[%s1356_s2 + $0x10] sm:$0xff]  ;;  %v871_v7 = vld [vmem:[%s1356_s2 + $0x8] sm:$0xff] }
  0x34   : > { %421 = vmatpush.bf16.msra.mxu1 %v412_v3  ;;  %392 = vmatpush.bf16.msra.mxu0 %v873_v1  ;;  %v870_v8 = vld [vmem:[%s1356_s2] sm:$0xff]  ;;  %v340_v10 = vld [vmem:[%s288_s30 + $0x8] sm:$0xff]  ;;  %vm384_vm2 = vcmask 523264   ;;  %v876_v13 = vld [vmem:[%s1358_s4 + $0x10] sm:$0xff]  ;;  %vm448_vm3 = vcmask 261120   ;;  %s784_s29 = sshll.u32 %s1239_s9, 3 }
  0x35   : > { %s1383_s3 = smov (!%p332_p13, %s785_s3), 3  ;;  %v339_v9 = vld [vmem:[%s288_s30] sm:$0xff]  ;;  %v877_v12 = vld [vmem:[%s1358_s4 + $0x18] sm:$0xff]  ;;  %v875_v14 = vld [vmem:[%s1358_s4 + $0x8] sm:$0xff]  ;;  %s884_s21 = sshll.u32 %s1163_s28, 3 }
  0x36   : > { %s786_s10 = sshll.u32 %s1383_s3, 3  ;;  %v341_v11 = vpack.c.bf16 %v340_v10, %v339_v9  ;;  %496 = vmatpush.bf16.msra.mxu3 %v877_v12  ;;  %458 = vmatpush.bf16.msra.mxu2 %v875_v14  ;;  %v874_v15 = vld [vmem:[%s1358_s4] sm:$0xff]  ;;  %v881_v32 = vld [vmem:[%s1358_s4 + $0x38] sm:$0xff]  ;;  %v880_v33 = vld [vmem:[%s1358_s4 + $0x30] sm:$0xff]  ;;  %s675_s26 = scalar_lea.hbm %s1361_s7, %s884_s21 }
  0x37   : > { %s335_s17 = scalar_lea.vmem %s1355_s1, %s786_s10  ;;  %v951_v17 = vld [vmem:[%s1360_s6 + $0x1] ss:$0 sm:$0xff]  ;;  %v952_v25 = vld [vmem:[%s1360_s6] ss:$0 sm:$0xff]  ;;  %v879_v34 = vld [vmem:[%s1358_s4 + $0x28] sm:$0xff]  ;;  %s329_s28 = scalar_lea.vmem [#allocation7], %s784_s29 }
  0x38   : > { %v342_v2 = vld [vmem:[%s335_s17] sm:$0xff]  ;;  %v343_v4 = vld [vmem:[%s335_s17 + $0x8] sm:$0xff]  ;;  %393 = vmatpush.bf16.msra.mxu0 %v872_v6  ;;  %539 = vmatpush.bf16.msrb.mxu1 %v881_v32  ;;  %s676_s3 = sshll.u32 %s329_s28, 4  ;;  %s678_s10 = sshll.u32 %s675_s26, 4  ;;  %s677_s3 = int_to_ptr.vmem [resolvable:$true] %s676_s3  ;;  %s679_s10 = int_to_ptr.hbm [resolvable:$true] %s678_s10 }
  0x39   : > { %v344_v5 = vpack.c.bf16 %v343_v4, %v342_v2  ;;  %v878_v35 = vld [vmem:[%s1358_s4 + $0x20] sm:$0xff]  ;;  %v883_v52 = vld [vmem:[%s1359_s5 + $0x8] sm:$0xff]  ;;  %s664_s15 = scalar_lea.sflag [#allocation4], %s1239_s9  ;;  %s1039_s30 = sshra.s32 %s679_s10, 4  ;;  %s1040_s30 = int_to_ptr.hbm [resolvable:$true] %s1039_s30 }
  0x3a   : > { %497 = vmatpush.bf16.msra.mxu3 %v876_v13  ;;  %459 = vmatpush.bf16.msra.mxu2 %v874_v15  ;;  %v953_v37 = vld [vmem:[%s1360_s6 + $0x3] ss:$0 sm:$0xff]  ;;  %v954_v45 = vld [vmem:[%s1360_s6 + $0x2] ss:$0 sm:$0xff]  ;;  %v955_v57 = vld [vmem:[%s1360_s6 + $0x4] ss:$0 sm:$0xff]  ;;  %p1046_p7 = scmp.lt.s32.totalorder %s1040_s30, %s1361_s7 }
  0x3b   : > { %804 = vmatmul.msk.bf16.vlgmr.msra.gmra.mxu1 %vm406_vm1, %v344_v5  ;;  %v882_v53 = vld [vmem:[%s1359_s5] sm:$0xff]  ;;  %s1041_s22 = scalar_lea.hbm %s1040_s30, 8  ;;  %s1045_s12 = scalar_lea.hbm %s1361_s7, 16 }
  0x3c   : > { %394 = vmatpush.bf16.msra.mxu0 %v871_v7  ;;  %540 = vmatpush.bf16.msrb.mxu1 %v880_v33  ;;  %v956_v2 = vld [vmem:[%s1360_s6 + $0x5] ss:$0 sm:$0xff]  ;;  %p1042_p4 = scmp.ne.s32.totalorder %s1040_s30, %s1041_s22  ;;  %p1047_p5 = scmp.lt.s32.totalorder %s1045_s12, %s1041_s22 }
  0x3e   : > { %568 = vmatpush.bf16.msrb.mxu2 %v879_v34  ;;  %608 = vmatpush.bf16.msrb.mxu3 %v883_v52  ;;  %p1043_p6 = pnand %p1042_p4, %p1194_p11  ;;  %p1048_p8 = por %p1047_p5, %p1046_p7 }
  0x40   : > { %395 = vmatpush.bf16.msra.mxu0 %v870_v8  ;;  %p1044_p0 = pneg %p1043_p6 }
  0x42   : > { %569 = vmatpush.bf16.msrb.mxu2 %v878_v35  ;;  %609 = vmatpush.bf16.msrb.mxu3 %v882_v53  ;;  %p1049_p9 = pnand %p1048_p8, %p1044_p0 }
  0x43   : > { %803 = vmatmul.msk.bf16.vlgmr.msra.gmra.mxu0 %vm384_vm2, %v341_v11 }
  0xb8   : > { %v423_v16 = vpop.f32.mrf.mxu1 }
  0xb9   : > { %v424_v18 = vadd.f32 %v951_v17, %v423_v16 }
  0xbb   : > { %v428_v20 = vmax.f32 %v424_v18, 0.0  ;;  %v616_v18 = vlaneseq }
  0xc0   : > { %v425_v19 = vpop.f32.mrf.mxu1  ;;  %v397_v23 = vpop.f32.mrf.mxu0 }
  0xc1   : > { %v426_v21 = vadd.f32 %v951_v17, %v425_v19  ;;  %v398_v26 = vadd.f32 %v952_v25, %v397_v23 }
  0xc3   : > { %v429_v22 = vmax.f32 %v426_v21, 0.0  ;;  %v402_v29 = vmax.f32 %v398_v26, 0.0 }
  0xc5   : > { %v468_v24 = vpack.c.bf16 %v429_v22, %v428_v20 }
  0xc7   : > { %826 = vmatmul.msk.bf16.vlgmr.msra.gmra.mxu3 %vm448_vm3, %v468_v24  ;;  %v617_v24 = vand.u32 127, %v616_v18 }
  0xc8   : > { %v399_v27 = vpop.f32.mrf.mxu0 }
  0xc9   : > { %v400_v28 = vadd.f32 %v952_v25, %v399_v27  ;;  %vm618_vm10 = vcmp.eq.s32.totalorder %v617_v24, 0 }
  0xcb   : > { %v403_v30 = vmax.f32 %v400_v28, 0.0 }
  0xcd   : > { %v430_v31 = vpack.c.bf16 %v403_v30, %v402_v29 }
  0xcf   : > { %813 = vmatmul.msk.bf16.vlgmr.msra.gmra.mxu2 %vm448_vm3, %v430_v31 }
 0x14a   : > { %v499_v36 = vpop.f32.mrf.mxu3 }
 0x14b   : > { %v500_v38 = vadd.f32 %v953_v37, %v499_v36 }
 0x14d   : > { %v504_v40 = vmax.f32 %v500_v38, 0.0 }
 0x152   : > { %v501_v39 = vpop.f32.mrf.mxu3  ;;  %v461_v43 = vpop.f32.mrf.mxu2 }
 0x153   : > { %v502_v41 = vadd.f32 %v953_v37, %v501_v39  ;;  %v462_v46 = vadd.f32 %v954_v45, %v461_v43 }
 0x155   : > { %v505_v42 = vmax.f32 %v502_v41, 0.0  ;;  %v466_v49 = vmax.f32 %v462_v46, 0.0 }
 0x157   : > { %v512_v44 = vpack.c.bf16 %v505_v42, %v504_v40 }
 0x159   : > { %843 = vmatmul.msk.bf16.vlgmr.msrb.gmra.mxu1 %vm448_vm3, %v512_v44 }
 0x15a   : > { %v463_v47 = vpop.f32.mrf.mxu2 }
 0x15b   : > { %v464_v48 = vadd.f32 %v954_v45, %v463_v47 }
 0x15d   : > { %v467_v50 = vmax.f32 %v464_v48, 0.0 }
 0x15f   : > { %v506_v51 = vpack.c.bf16 %v467_v50, %v466_v49 }
 0x161   : > { %852 = vmatmul.msk.bf16.vlgmr.msrb.gmra.mxu2 %vm448_vm3, %v506_v51 }
 0x1d6   : > { %v542_v54 = vpop.f32.mrf.mxu1 }
 0x1de   : > { %v544_v58 = vpop.f32.mrf.mxu1 }
 0x1e4   : > { %v571_v55 = vpop.f32.mrf.mxu2 }
 0x1e5   : > { %v572_v56 = vadd.f32 %v571_v55, %v542_v54 }
 0x1e7   : > { %v577_v60 = vadd.f32 %v955_v57, %v572_v56 }
 0x1e9   : > { %v579_v63 = vmax.f32 %v577_v60, 0.0 }
 0x1ec   : > { %v573_v59 = vpop.f32.mrf.mxu2 }
 0x1ed   : > { %v574_v61 = vadd.f32 %v573_v59, %v544_v58 }
 0x1ef   : > { %v578_v62 = vadd.f32 %v955_v57, %v574_v61 }
 0x1f1   : > { %v580_v0 = vmax.f32 %v578_v62, 0.0 }
 0x1f3   : > { %v581_v1 = vpack.c.bf16 %v580_v0, %v579_v63 }
 0x1f5   : > { %861 = vmatmul.msk.bf16.vlgmr.msrb.gmra.mxu3 %vm448_vm3, %v581_v1 }
 0x278   : > { %v611_v3 = vpop.f32.mrf.mxu3 }
 0x279   : > { %v612_v4 = vadd.f32 %v956_v2, %v611_v3 }
 0x27b   : > { %v862_v5 = vmul.f32 -1.442695, %v612_v4 }
 0x27d   : > { %957 = vpow2.f32 %v862_v5 }
 0x280   : > { %v613_v6 = vpop.f32.mrf.mxu3 }
 0x281   : > { %v614_v7 = vadd.f32 %v956_v2, %v613_v6 }
 0x283   : > { %v958_v8 = vpop.eup %957  ;;  %v863_v9 = vmul.f32 -1.442695, %v614_v7 }
 0x284   : > { %v625_v10 = vadd.f32 1.0, %v958_v8 }
 0x285   : > { %959 = vpow2.f32 %v863_v9 }
 0x286   : > { %961 = vrcp.f32 %v625_v10  ;;  %v638_v21 = vand.u32 2147483648, %v625_v10  ;;  %vm632_vm5 = vweird.f32 %v625_v10  ;;  %v636_v22 = vand.u32 2147483647, %v625_v10 }
 0x288   : > { %v639_v29 = vor.u32 1.1754944e-38, %v638_v21  ;;  %vm637_vm8 = vcmp.eq.f32.partialorder %v636_v22, 8.507059e+37 }
 0x28b   : > { %v960_v11 = vpop.eup %959 }
 0x28c   : > { %v962_v12 = vpop.eup %961  ;;  %v626_v13 = vadd.f32 1.0, %v960_v11 }
 0x28d   : > { %v628_v14 = vmul.f32 %v962_v12, %v625_v10  ;;  %vm633_vm4 = vweird.f32 %v962_v12 }
 0x28e   : > { %963 = vrcp.f32 %v626_v13  ;;  %vm634_vm6 = vmor %vm632_vm5, %vm633_vm4  ;;  %v653_v25 = vand.u32 2147483648, %v626_v13  ;;  %v651_v28 = vand.u32 2147483647, %v626_v13  ;;  %vm647_vm9 = vweird.f32 %v626_v13 }
 0x28f   : > { %v629_v15 = vsub.f32 1.0, %v628_v14 }
 0x290   : > { %v654_v32 = vor.u32 1.1754944e-38, %v653_v25  ;;  %vm652_vm12 = vcmp.eq.f32.partialorder %v651_v28, 8.507059e+37 }
 0x291   : > { %v630_v16 = vmul.f32 %v962_v12, %v629_v15 }
 0x293   : > { %v631_v19 = vadd.f32 %v962_v12, %v630_v16 }
 0x294   : > { %v964_v17 = vpop.eup %963 }
 0x295   : > { %v643_v20 = vmul.f32 %v964_v17, %v626_v13  ;;  %v635_v26 = vsel %vm634_vm6, %v962_v12, %v631_v19  ;;  %vm648_vm7 = vweird.f32 %v964_v17 }
 0x296   : > { %v640_v31 = vsel %vm637_vm8, %v639_v29, %v635_v26  ;;  %vm649_vm11 = vmor %vm647_vm9, %vm648_vm7 }
 0x297   : > { %v644_v23 = vsub.f32 1.0, %v643_v20  ;;  %v657_v35 = vsel %vm618_vm10, %v640_v31, %v612_v4 }
 0x299   : > { %v645_v27 = vmul.f32 %v964_v17, %v644_v23 }
 0x29b   : > { %v646_v30 = vadd.f32 %v964_v17, %v645_v27 }
 0x29d   : > { %v650_v33 = vsel %vm649_vm11, %v964_v17, %v646_v30 }
 0x29e   : > { %v655_v34 = vsel %vm652_vm12, %v654_v32, %v650_v33 }
 0x29f   : > { %v658_v36 = vsel %vm618_vm10, %v655_v34, %v614_v7 }
 0x2a0   : > { %v888_v37 = vpack.c.bf16 %v658_v36, %v657_v35 }
 0x2a2   : > { %889 = vst [vmem:[%s329_s28] sm:$0xff] %v888_v37  }
 0x2a3   : > { %1052 = shalt.err (!%p1049_p9)
}
 0x2a4   : > { %s1100_s9 = smov 64   ;;  %s1101_s20 = smov 4  }
 0x2a5   : > { %896 = dma.vmem_to_hbm [thread:$0]  (%p1194_p11), %s677_s3, 128, %s679_s10, %s664_s15, %s1100_s9, %s1100_s9, %s1101_s20  }
 0x2a6 PF: > { %s693_s8 = sand.u32 1, %s1083_s24   ;;  %p1376_p10 = scmp.ge.s32.totalorder %s1095_s27, 2 }
 0x2a7   : > { %s694_s29 = scalar_lea.sflag [#allocation4], %s693_s8 }
 0x2a8   : > { %p907_p1 = pnand %p1376_p10, %p1198_p12 }
 0x2aa   : > { %p908_p2 = pneg %p907_p1 }
 0x2ac   : > { %1078 = dma.done.wait (%p908_p2), %s694_s29, 128  }
 0x2ad   : > { %1080 = vsyncadd (%p908_p2), %s694_s29, 4294967168  ;;  %s1377_s27 = sld [smem:[#allocation12_spill]]  ;;  %s1380_s24 = smov %s1087_s25 }
 0x2ae   : > { %s1378_s21 = sld [smem:[#allocation11_spill]] }
 0x2af   : > { %s1379_s26 = sld [smem:[#allocation13_spill]] }
 0x2b3   : > { %p21_p3 = scmp.ge.s32.totalorder %s1377_s27, 4  }
 0x2b4   : > { %s1381_s25 = smov %s1378_s21 }
 0x2b5   :  { %23 = sbr.rel (!%p21_p3) target bundleno = 8 (0x8), region = 103 }
 0x2ba   :  { %700 = vsyncpa [#allocation3], 1 }
 0x2bb   :  { %702 = vsyncpa [#allocation3 + $0x1], 1 }
 0x2bc   :  { %703 = vsyncpa [#allocation6], 1 }
 0x2bd   :  { %704 = vsyncpa [#allocation4], 1 }
 0x2be   :  { %706 = vsyncpa [#allocation4 + $0x1], 1 }

</bundles_post_ra>
